<compile_context>
chip_gen: v6e
topology: v6e:2x2x1
jax: 0.10.0
libtpu: 0.0.40
codegen_flags: <defaults>
</compile_context>

<pallas_src>
import jax
import jax.numpy as jnp
from jax import lax
from jax.experimental import pallas as pl
from jax.experimental.pallas import tpu as pltpu


def _interp_matrix(out_size, in_size, scale, dtype=jnp.float32):
    """Interpolation matrix M (out_size, in_size) such that y = M @ x
    reproduces PyTorch bilinear interpolation along one axis
    (align_corners=False, i.e. half-pixel centers)."""
    coords = (jnp.arange(out_size, dtype=jnp.float32) + 0.5) / float(scale) - 0.5
    coords = jnp.clip(coords, 0.0, float(in_size - 1))
    lo = jnp.floor(coords).astype(jnp.int32)
    hi = jnp.minimum(lo + 1, in_size - 1)
    frac = coords - lo.astype(jnp.float32)
    m = (jax.nn.one_hot(lo, in_size, dtype=jnp.float32) * (1.0 - frac)[:, None]
         + jax.nn.one_hot(hi, in_size, dtype=jnp.float32) * frac[:, None])
    return m.astype(dtype)


def _interp_kernel(x_ref, awt_ref, ah_ref, o_ref):
    # x_ref:   (CB, H, W)   channel block of spatial planes
    # awt_ref: (W, Wo)      column interpolation matrix, pre-transposed
    # ah_ref:  (Ho, H)      row interpolation matrix
    # o_ref:   (CB, Ho, Wo)
    cb, h, w = x_ref.shape
    ho = ah_ref.shape[0]
    wo = awt_ref.shape[1]

    x = x_ref[...]
    awt = awt_ref[...]

    # W-side resize.  When H is a sublane multiple, the (CB,H,W)->(CB*H,W)
    # collapse is layout-free, so a single wide MXU matmul covers the block.
    if h % 8 == 0:
        tmp = jnp.dot(x.reshape(cb * h, w), awt,
                      preferred_element_type=jnp.float32).reshape(cb, h, wo)
    else:
        tmp = lax.dot_general(
            x, jnp.broadcast_to(awt[None, :, :], (cb, w, wo)),
            dimension_numbers=(((2,), (1,)), ((0,), (0,))),
            preferred_element_type=jnp.float32)          # (CB, H, Wo)

    # H-side resize: batched matmul producing (c, oh, ow) directly
    # (no post-dot transpose / relayout).
    ah_b = jnp.broadcast_to(ah_ref[...][None, :, :], (cb, ho, h))
    out = lax.dot_general(
        ah_b, tmp,
        dimension_numbers=(((2,), (1,)), ((0,), (0,))),
        preferred_element_type=jnp.float32)              # (CB, Ho, Wo)
    o_ref[...] = out.astype(o_ref.dtype)


def _choose_channel_block(nc, h, w, ho, wo, itemsize,
                          vmem_budget_bytes=16 << 20):
    """Largest channel block that (a) divides N*C, (b) fits a conservative
    VMEM budget with double buffering (safe on v5e/v6e/v7x), and (c) leaves
    >= 2 grid steps whenever possible so both v7x TensorCores get work."""
    per_ch = 2 * (h * w + ho * wo) * itemsize  # double-buffered in + out
    min_steps = 2 if nc >= 2 else 1
    cb = 1
    for cand in range(1, nc + 1):
        if nc % cand != 0:
            continue
        if cand * per_ch > vmem_budget_bytes:
            continue
        if nc // cand < min_steps:
            continue
        cb = cand
    return cb


def interpolate_bilinear(x, scale_factor=2):
    """Pallas equivalent of F.interpolate(x, scale_factor=scale_factor,
    mode='bilinear') on an NCHW tensor."""
    N, C, H, W = x.shape
    Ho, Wo = int(H * scale_factor), int(W * scale_factor)
    NC = N * C
    itemsize = jnp.dtype(x.dtype).itemsize

    a_h = _interp_matrix(Ho, H, scale_factor, x.dtype)        # (Ho, H)
    a_wT = _interp_matrix(Wo, W, scale_factor, x.dtype).T     # (W, Wo)

    cb = _choose_channel_block(NC, H, W, Ho, Wo, itemsize)
    grid = (NC // cb,)

    # Free wrapper-side reshape: NCHW is contiguous over (N, C).
    x_flat = x.reshape(NC, H, W)

    flops = 2 * NC * (H * W * Wo + Ho * H * Wo)
    bytes_accessed = (NC * (H * W + Ho * Wo) + Ho * H + W * Wo) * itemsize

    # TODO(synk): for very large planes (e.g. >512x512) add an Ho-row-tiled
    # grid axis (tile A_h rows + output rows) so per-block VMEM stays bounded
    # on v7x's 64 MiB VMEM.
    out_flat = pl.pallas_call(
        _interp_kernel,
        out_shape=jax.ShapeDtypeStruct((NC, Ho, Wo), x.dtype),
        grid_spec=pltpu.PrefetchScalarGridSpec(
            num_scalar_prefetch=0,
            grid=grid,
            in_specs=[
                # channel block of input planes
                pl.BlockSpec((cb, H, W), lambda i: (i, 0, 0)),
                # interpolation matrices: full block, same for every step
                pl.BlockSpec((W, Wo), lambda i: (0, 0)),
                pl.BlockSpec((Ho, H), lambda i: (0, 0)),
            ],
            out_specs=pl.BlockSpec((cb, Ho, Wo), lambda i: (i, 0, 0)),
        ),
        compiler_params=pltpu.CompilerParams(
            dimension_semantics=("parallel",),
            vmem_limit_bytes=48 << 20),
        cost_estimate=pl.CostEstimate(
            flops=flops, transcendentals=0, bytes_accessed=bytes_accessed),
    )(x_flat, a_wT, a_h)

    return out_flat.reshape(N, C, Ho, Wo)


def _reference(x, scale_factor=2):
    # Pure-JAX reference using the same separable formulation.
    N, C, H, W = x.shape
    Ho, Wo = int(H * scale_factor), int(W * scale_factor)
    a_h = _interp_matrix(Ho, H, scale_factor, jnp.float32)
    a_w = _interp_matrix(Wo, W, scale_factor, jnp.float32)
    return jnp.einsum("oh,nchw,pw->ncop", a_h, x.astype(jnp.float32), a_w
                      ).astype(x.dtype)


if __name__ == "__main__":
    key = jax.random.PRNGKey(0)
    # Interpolate(scale_factor=2, mode='bilinear') on a small NCHW input.
    x = jax.random.normal(key, (2, 4, 16, 16), dtype=jnp.float32)

    out = interpolate_bilinear(x, scale_factor=2)
    out = jax.block_until_ready(out)

    assert out.shape == (2, 4, 32, 32), out.shape
    ref = _reference(x, scale_factor=2)
    assert jnp.allclose(out, ref, atol=1e-5, rtol=1e-5), "mismatch vs reference"

    print("KERNEL_OK")
</pallas_src>

<mosaic_0001>
module attributes {stable_mosaic.version = 11 : i64} {
  func.func @_interp_kernel(%arg0: i32, %arg1: memref<4x16x16xf32, #tpu.memory_space<vmem>>, %arg2: memref<16x32xf32, #tpu.memory_space<vmem>>, %arg3: memref<32x16xf32, #tpu.memory_space<vmem>>, %arg4: memref<4x32x32xf32, #tpu.memory_space<vmem>>) attributes {dimension_semantics = [#tpu.dimension_semantics<parallel>], iteration_bounds = array<i64: 2>, scalar_prefetch = 0 : i64, scratch_operands = 0 : i64, tpu.core_type = #tpu.core_type<tc>, window_params = [{transform_indices = @transform_0, window_bounds = array<i64: 4, 16, 16>}, {pipeline_mode = #tpu.pipeline_mode<synchronous>, transform_indices = @transform_1, window_bounds = array<i64: 16, 32>}, {pipeline_mode = #tpu.pipeline_mode<synchronous>, transform_indices = @transform_2, window_bounds = array<i64: 32, 16>}, {transform_indices = @transform_3, window_bounds = array<i64: 4, 32, 32>}]} {
    %c0 = arith.constant 0 : index
    %c0_0 = arith.constant 0 : index
    %c0_1 = arith.constant 0 : index
    %0 = vector.load %arg1[%c0, %c0_0, %c0_1] : memref<4x16x16xf32, #tpu.memory_space<vmem>>, vector<4x16x16xf32>
    %c0_2 = arith.constant 0 : index
    %c0_3 = arith.constant 0 : index
    %1 = vector.load %arg2[%c0_2, %c0_3] : memref<16x32xf32, #tpu.memory_space<vmem>>, vector<16x32xf32>
    %2 = vector.shape_cast %0 : vector<4x16x16xf32> to vector<64x16xf32>
    %cst = arith.constant dense<0.000000e+00> : vector<64x32xf32>
    %3 = tpu.matmul %2, %1, %cst {dimension_numbers = #tpu.dot_dimension_numbers<[1], [0], [0], [1], [0, 0, 1, 1], [], []>} : vector<64x16xf32>, vector<16x32xf32>, vector<64x32xf32> -> vector<64x32xf32>
    %4 = vector.shape_cast %3 : vector<64x32xf32> to vector<4x16x32xf32>
    %c0_4 = arith.constant 0 : index
    %c0_5 = arith.constant 0 : index
    %5 = vector.load %arg3[%c0_4, %c0_5] : memref<32x16xf32, #tpu.memory_space<vmem>>, vector<32x16xf32>
    %6 = vector.shape_cast %5 : vector<32x16xf32> to vector<1x32x16xf32>
    %7 = vector.shape_cast %6 : vector<1x32x16xf32> to vector<1x32x16xf32>
    %8 = vector.broadcast %7 : vector<1x32x16xf32> to vector<4x32x16xf32>
    %cst_6 = arith.constant dense<0.000000e+00> : vector<4x32x32xf32>
    %9 = tpu.matmul %8, %4, %cst_6 {dimension_numbers = #tpu.dot_dimension_numbers<[2], [1], [1], [2], [0, 0, 0, 1, 1, 2], [0], [0]>} : vector<4x32x16xf32>, vector<4x16x32xf32>, vector<4x32x32xf32> -> vector<4x32x32xf32>
    %c0_7 = arith.constant 0 : index
    %c0_8 = arith.constant 0 : index
    %c0_9 = arith.constant 0 : index
    %10 = vector.load %arg4[%c0_7, %c0_8, %c0_9] : memref<4x32x32xf32, #tpu.memory_space<vmem>>, vector<4x32x32xf32>
    tpu.vector_store %arg4[%c0_7, %c0_8, %c0_9], %9 {strides = array<i32>} : memref<4x32x32xf32, #tpu.memory_space<vmem>>, vector<4x32x32xf32>,
    return
  }
  func.func @transform_0(%arg0: i32) -> (i32, i32, i32) {
    %c0_i32 = arith.constant 0 : i32
    %c0_i32_0 = arith.constant 0 : i32
    %c0_i32_1 = arith.constant 0 : i32
    return %arg0, %c0_i32, %c0_i32_0 : i32, i32, i32
  }
  func.func @transform_1(%arg0: i32) -> (i32, i32) {
    %c0_i32 = arith.constant 0 : i32
    %c0_i32_0 = arith.constant 0 : i32
    %c0_i32_1 = arith.constant 0 : i32
    return %c0_i32, %c0_i32_0 : i32, i32
  }
  func.func @transform_2(%arg0: i32) -> (i32, i32) {
    %c0_i32 = arith.constant 0 : i32
    %c0_i32_0 = arith.constant 0 : i32
    %c0_i32_1 = arith.constant 0 : i32
    return %c0_i32, %c0_i32_0 : i32, i32
  }
  func.func @transform_3(%arg0: i32) -> (i32, i32, i32) {
    %c0_i32 = arith.constant 0 : i32
    %c0_i32_0 = arith.constant 0 : i32
    %c0_i32_1 = arith.constant 0 : i32
    return %arg0, %c0_i32, %c0_i32_0 : i32, i32, i32
  }
}

</mosaic_0001>

<bundles_post_ra>
// kernel: tpu_custom_call.1
= control target key start
LH: loop header
LB: loop body
LE: loop exit
PB: predicated region body
PF: predicated region fallthrough
CT: control target
= control target key end

     0   :  { %8 = vsyncpa [#allocation3], 0  ;;  %s1329_s0 = inlined_call_operand.hbm [shape: f32[8,16,16], index: 0, kind: input, shape index: {}]   ;;  %s1330_s1 = inlined_call_operand.vmem [shape: f32[16,32], index: 1, kind: input, shape index: {}]   ;;  %s1331_s2 = inlined_call_operand.vmem [shape: f32[32,16], index: 2, kind: input, shape index: {}]   ;;  %s1332_s3 = inlined_call_operand.hbm [shape: f32[8,32,32], index: 3, kind: output, shape index: {}]  }
   0x1   :  { %10 = vsyncpa [#allocation3 + $0x1], 0 }
   0x2   :  { %11 = vsyncpa [#allocation4], 0 }
   0x3   :  { %13 = vsyncpa [#allocation4 + $0x1], 0  ;;  %s1097_s12 = smov 0   ;;  %s1099_s13 = smov 0  }
   0x4   :  { %s1101_s14 = smov 0   ;;  %s1103_s15 = smov 0  }
   0x5 LB: > { %s1118_s16 = sadd.s32 4294967295, %s1069_s15   ;;  %s793_s17 = sadd.s32 4294967294, %s1069_s15   ;;  %s1069_s15 = sphi %s1103_s15, %s1347_s15   ;;  %s1065_s14 = sphi %s1101_s14, %s1346_s14   ;;  %s1061_s13 = sphi %s1099_s13, %s1345_s13   ;;  %s1057_s12 = sphi %s1097_s12, %s1344_s12  }
   0x6   : > { %s1122_s18 = sadd.s32 1, %s1069_s15   ;;  %s26_s19 = sadd.s32 1, %s1065_s14 }
   0x7   : > { %s23_s20 = ssub.s32 %s1069_s15, %s1122_s18  ;;  %p33_p0 = scmp.ne.s32.totalorder %s1065_s14, %s1061_s13 }
   0x8   : > { %p24_p1 = scmp.eq.s32.totalorder %s23_s20, 0  ;;  %p34_p2 = scmp.eq.s32.totalorder %s1069_s15, 0 }
   0x9   : > { %p39_p3 = scmp.ne.s32.totalorder %s1061_s13, %s1057_s12  ;;  %p40_p4 = scmp.eq.s32.totalorder %s1118_s16, 0 }
   0xa   : > { %s1134_s21 = scalar_select %p24_p1, %s1065_s14, %s26_s19  }
   0xb   : > { %p1136_p5 = por %p34_p2, %p33_p0  ;;  %p1140_p6 = por %p40_p4, %p39_p3 }
   0xc   : > { %p105_p7 = scmp.eq.s32.totalorder %s1118_s16, 1  ;;  %p111_p8 = scmp.eq.s32.totalorder %s793_s17, 1 }
   0xd   : > { %s1336_s23 = scalar_select %p1140_p6, 1, 0 }
   0xe   : > { %p939_p10 = scmp.lt.s32.totalorder %s1069_s15, 2  ;;  %p1147_p11 = por %p105_p7, %p33_p0 }
   0xf   : > { %p1151_p12 = por %p111_p8, %p39_p3  ;;  %s137_s26 = sand.u32 1, %s1065_s14  }
  0x10   : > { %s1337_s24 = scalar_select %p1147_p11, 1, 0 }
  0x11   : > { %s1338_s25 = scalar_select %p1151_p12, 1, 0 }
  0x12   : > { %s834_s27 = sshll.u32 %s1069_s15, 10  ;;  %s796_s28 = sshll.u32 %s137_s26, 6 }
  0x13   : > { %s1160_s4 = scalar_lea.hbm %s1329_s0, %s834_s27  ;;  %s141_s5 = scalar_lea.vmem [#allocation2], %s796_s28 }
  0x14   : > { %s149_s6 = sshll.u32 %s141_s5, 4  ;;  %p1164_p13 = pnand %p939_p10, %p1136_p5  ;;  %s1168_s6 = int_to_ptr.vmem [resolvable:$true] %s149_s6 }
  0x15   : > { %s1170_s8 = scalar_lea.sflag [#allocation3], %s137_s26  ;;  %s977_s9 = scalar_lea.hbm %s1160_s4, 1024 }
  0x16   : > { %p978_p0 = scmp.ne.s32.totalorder %s1160_s4, %s977_s9  ;;  %p979_p1 = pneg %p1164_p13 }
  0x17   : > { %s982_s17 = scalar_lea.hbm %s1329_s0, 2048  ;;  %p983_p4 = scmp.lt.s32.totalorder %s1160_s4, %s1329_s0 }
  0x18   : > { %p980_p2 = pnand %p979_p1, %p978_p0  ;;  %p984_p5 = scmp.lt.s32.totalorder %s982_s17, %s977_s9 }
  0x1a   : > { %p981_p3 = pneg %p980_p2  ;;  %p985_p7 = por %p984_p5, %p983_p4 }
  0x1c   : > { %p986_p8 = pnand %p985_p7, %p981_p3 }
  0x1e   : > { %989 = shalt.err (!%p986_p8)
}
  0x1f   : > { %s990_s22 = scalar_lea.vmem %s1168_s6, 1024  ;;  %s1071_s26 = smov [#allocation2]  }
  0x20   : > { %p991_p10 = scmp.ne.s32.totalorder %s1168_s6, %s990_s22  ;;  %s995_s27 = sshll.u32 %s1071_s26, 4  ;;  %s996_s27 = int_to_ptr.vmem [resolvable:$false] %s995_s27 }
  0x21   : > { %s997_s28 = scalar_lea.vmem %s996_s27, 2048  ;;  %p998_p2 = scmp.lt.s32.totalorder %s1168_s6, %s996_s27 }
  0x22   : > { %p993_p9 = pnand %p991_p10, %p979_p1  ;;  %p999_p12 = scmp.lt.s32.totalorder %s997_s28, %s990_s22 }
  0x24   : > { %p994_p0 = pneg %p993_p9  ;;  %p1000_p11 = por %p999_p12, %p998_p2 }
  0x26   : > { %p1001_p6 = pnand %p1000_p11, %p994_p0 }
  0x28   : > { %1004 = shalt.err (!%p1001_p6)
}
  0x29   : > { %s1072_s29 = smov 128   ;;  %s1073_s30 = smov 8  }
  0x2a   : > { %934 = dma.hbm_to_vmem [thread:$0]  (!%p1164_p13), %s1160_s4, 1024, %s1168_s6, %s1170_s8, %s1072_s29, %s1072_s29, %s1073_s30  }
  0x2b   : > { %p800_p9 = scmp.ge.s32.totalorder %s1069_s15, 1  ;;  %p157_p1 = scmp.lt.s32.totalorder %s1069_s15, 3 }
  0x2d   : > { %p158_p3 = pnand %p800_p9, %p157_p1 }
  0x2e   : > { %s1194_s5 = sand.u32 (!%p158_p3), 1, %s1061_s13   ;;  %p1340_p6 = scmp.ne.s32.totalorder (!%p158_p3), %s1336_s23, 0 }
  0x2f   : > { %161 = sbr.rel (%p158_p3) target bundleno = 484 (0x1e4), region = 32  ;;  %s801_s9 = sshll.u32 (!%p158_p3), %s1194_s5, 6 }
  0x30   : > { %s164_s10 = scalar_lea.sflag (!%p158_p3), [#allocation3], %s1194_s5  ;;  %s167_s11 = scalar_lea.vmem (!%p158_p3), [#allocation2], %s801_s9 }
  0x34   : > { %1048 = dma.done.wait (%p1340_p6), %s164_s10, 1024  }
  0x35   : > { %1050 = vsyncadd (%p1340_p6), %s164_s10, 4294966272  ;;  %vm202_vm0 = vcmask 130048   ;;  %v201_v0 = vld [vmem:[%s1330_s1 + $0x8] sm:$0xff]  ;;  %v200_v1 = vld [vmem:[%s1330_s1] sm:$0xff]  ;;  %s802_s29 = sshll.u32 %s1194_s5, 7  ;;  %vm688_vm1 = vcmask 261120  }
  0x36   : > { %v192_v2 = vld [vmem:[%s167_s11] sm:$0xff]  ;;  %871 = vmatprep.subr.mxu0 %v201_v0  ;;  %v193_v3 = vld [vmem:[%s167_s11 + $0x8] sm:$0xff]  ;;  %v194_v4 = vld [vmem:[%s167_s11 + $0x10] sm:$0xff]  ;;  %s1245_s30 = scalar_lea.vmem [#allocation5], %s802_s29  ;;  %s836_s9 = sshll.u32 %s1118_s16, 11 }
  0x37   : > { %875 = vmatprep.mubr.msk.f32.mxu0 %vm202_vm0, %v192_v2  ;;  %872 = vmatpush3.msra.mxu0 %v201_v0  ;;  %v195_v5 = vld [vmem:[%s167_s11 + $0x18] sm:$0xff]  ;;  %v196_v6 = vld [vmem:[%s167_s11 + $0x20] sm:$0xff]  ;;  %v197_v7 = vld [vmem:[%s167_s11 + $0x28] sm:$0xff]  ;;  %s720_s10 = sshll.u32 %s1245_s30, 4  ;;  %s1280_s6 = scalar_lea.hbm %s1332_s3, %s836_s9  ;;  %s1282_s10 = int_to_ptr.vmem [resolvable:$true] %s720_s10 }
  0x38   : > { %873 = vmatprep.subr.mxu0 %v200_v1  ;;  %v198_v8 = vld [vmem:[%s167_s11 + $0x30] sm:$0xff]  ;;  %v199_v9 = vld [vmem:[%s167_s11 + $0x38] sm:$0xff]  ;;  %v332_v10 = vld [vmem:[%s1331_s2] sm:$0xff]  ;;  %s706_s16 = scalar_lea.sflag [#allocation4], %s1194_s5  ;;  %s1005_s7 = scalar_lea.vmem %s1282_s10, 2048 }
  0x39   : > { %874 = vmatpush3.msra.mxu0 %v200_v1  ;;  %891 = vmatprep.mubr.msk.f32.mxu1 %vm202_vm0, %v332_v10  ;;  %v333_v13 = vld [vmem:[%s1331_s2 + $0x8] sm:$0xff]  ;;  %v334_v14 = vld [vmem:[%s1331_s2 + $0x10] sm:$0xff]  ;;  %v335_v17 = vld [vmem:[%s1331_s2 + $0x18] sm:$0xff]  ;;  %p1006_p11 = scmp.ne.s32.totalorder %s1282_s10, %s1005_s7  ;;  %p1341_p12 = scmp.ne.s32.totalorder %s1337_s24, 0 }
  0x3a   : > { %876 = vmatmul.mubr.msk.f32.vlgmr.msra.gmra.mxu0 %vm202_vm0, %v193_v3  ;;  %s1074_s8 = smov [#allocation5]  }
  0x3b   : > { %878 = vmatprep.mubr.msk.f32.mxu0 %vm202_vm0, %v194_v4  ;;  %p1007_p13 = pnand %p1006_p11, %p1341_p12  ;;  %s1009_s23 = sshll.u32 %s1074_s8, 4  ;;  %s1010_s23 = int_to_ptr.vmem [resolvable:$false] %s1009_s23 }
  0x3c   : > { %s1011_s17 = scalar_lea.vmem %s1010_s23, 4096  ;;  %p1012_p5 = scmp.lt.s32.totalorder %s1282_s10, %s1010_s23 }
  0x3d   : > { %p1008_p4 = pneg %p1007_p13  ;;  %p1013_p7 = scmp.lt.s32.totalorder %s1011_s17, %s1005_s7 }
  0x3e   : > { %879 = vmatmul.mubr.msk.f32.gmra.mxu0 %vm202_vm0, %v195_v5 }
  0x3f   : > { %881 = vmatprep.mubr.msk.f32.mxu0 %vm202_vm0, %v196_v6  ;;  %p1014_p8 = por %p1013_p7, %p1012_p5 }
  0x41   : > { %p1015_p10 = pnand %p1014_p8, %p1008_p4 }
  0x42   : > { %882 = vmatmul.mubr.msk.f32.gmra.mxu0 %vm202_vm0, %v197_v7 }
  0x43   : > { %884 = vmatprep.mubr.msk.f32.mxu0 %vm202_vm0, %v198_v8 }
  0x46   : > { %885 = vmatmul.mubr.msk.f32.gmra.mxu0 %vm202_vm0, %v199_v9 }
  0x47   : > { %911 = vmatprep.mubr.msk.f32.mxu0 %vm202_vm0, %v332_v10 }
  0xfa   : > { %v877_v11 = vpop.f32.mrf.mxu0 }
  0xfb   : > { %887 = vmatprep.subr.mxu1 %v877_v11 }
  0xfc   : > { %v293_v12 = vpop.f32.mrf.mxu0  ;;  %888 = vmatpush3.msra.mxu1 %v877_v11 }
  0xfd   : > { %889 = vmatprep.subr.mxu1 %v293_v12 }
  0xfe   : > { %v880_v15 = vpop.f32.mrf.mxu0  ;;  %890 = vmatpush3.msra.mxu1 %v293_v12 }
  0xff   : > { %897 = vmatprep.subr.mxu1 %v880_v15  ;;  %892 = vmatmul.mubr.msk.f32.vlgmr.msra.gmra.mxu1 %vm202_vm0, %v333_v13 }
 0x100   : > { %v303_v16 = vpop.f32.mrf.mxu0  ;;  %898 = vmatpush3.msra.mxu1 %v880_v15  ;;  %894 = vmatprep.mubr.msk.f32.mxu1 %vm202_vm0, %v334_v14 }
 0x101   : > { %899 = vmatprep.subr.mxu1 %v303_v16 }
 0x102   : > { %v883_v18 = vpop.f32.mrf.mxu0  ;;  %900 = vmatpush3.msra.mxu1 %v303_v16 }
 0x103   : > { %907 = vmatprep.subr.mxu0 %v883_v18  ;;  %895 = vmatmul.mubr.msk.f32.gmra.mxu1 %vm202_vm0, %v335_v17 }
 0x104   : > { %v313_v19 = vpop.f32.mrf.mxu0  ;;  %908 = vmatpush3.msra.mxu0 %v883_v18  ;;  %901 = vmatprep.mubr.msk.f32.mxu1 %vm202_vm0, %v332_v10 }
 0x105   : > { %909 = vmatprep.subr.mxu0 %v313_v19 }
 0x106   : > { %910 = vmatpush3.msra.mxu0 %v313_v19  ;;  %v886_v20 = vpop.f32.mrf.mxu0 }
 0x107   : > { %917 = vmatprep.subr.mxu1 %v886_v20  ;;  %902 = vmatmul.mubr.msk.f32.vlgmr.msra.gmra.mxu1 %vm202_vm0, %v333_v13 }
 0x108   : > { %v323_v21 = vpop.f32.mrf.mxu0  ;;  %918 = vmatpush3.msra.mxu1 %v886_v20  ;;  %904 = vmatprep.mubr.msk.f32.mxu1 %vm202_vm0, %v334_v14 }
 0x109   : > { %919 = vmatprep.subr.mxu1 %v323_v21  ;;  %912 = vmatmul.mubr.msk.f32.vlgmr.msra.gmra.mxu0 %vm202_vm0, %v333_v13 }
 0x10a   : > { %920 = vmatpush3.msra.mxu1 %v323_v21  ;;  %914 = vmatprep.mubr.msk.f32.mxu0 %vm202_vm0, %v334_v14 }
 0x10b   : > { %905 = vmatmul.mubr.msk.f32.gmra.mxu1 %vm202_vm0, %v335_v17 }
 0x10c   : > { %921 = vmatprep.mubr.msk.f32.mxu1 %vm202_vm0, %v332_v10 }
 0x10d   : > { %915 = vmatmul.mubr.msk.f32.gmra.mxu0 %vm202_vm0, %v335_v17 }
 0x10f   : > { %922 = vmatmul.mubr.msk.f32.vlgmr.msra.gmra.mxu1 %vm202_vm0, %v333_v13 }
 0x110   : > { %924 = vmatprep.mubr.msk.f32.mxu1 %vm202_vm0, %v334_v14 }
 0x113   : > { %925 = vmatmul.mubr.msk.f32.gmra.mxu1 %vm202_vm0, %v335_v17 }
 0x1bf   : > { %v893_v22 = vpop.f32.mrf.mxu1 }
 0x1c0   : > { %690 = vst.msk [vmem:[%s1245_s30 + $0x8] sm:$0xff] %vm688_vm1, %v893_v22 }
 0x1c1   : > { %v414_v23 = vpop.f32.mrf.mxu1 }
 0x1c2   : > { %689 = vst.msk [vmem:[%s1245_s30] sm:$0xff] %vm688_vm1, %v414_v23 }
 0x1c3   : > { %v896_v24 = vpop.f32.mrf.mxu1 }
 0x1c4   : > { %692 = vst.msk [vmem:[%s1245_s30 + $0x18] sm:$0xff] %vm688_vm1, %v896_v24 }
 0x1c5   : > { %v424_v25 = vpop.f32.mrf.mxu1 }
 0x1c6   : > { %691 = vst.msk [vmem:[%s1245_s30 + $0x10] sm:$0xff] %vm688_vm1, %v424_v25 }
 0x1c7   : > { %v903_v26 = vpop.f32.mrf.mxu1 }
 0x1c8   : > { %694 = vst.msk [vmem:[%s1245_s30 + $0x28] sm:$0xff] %vm688_vm1, %v903_v26 }
 0x1c9   : > { %v499_v27 = vpop.f32.mrf.mxu1  ;;  %v913_v28 = vpop.f32.mrf.mxu0 }
 0x1ca   : > { %693 = vst.msk [vmem:[%s1245_s30 + $0x20] sm:$0xff] %vm688_vm1, %v499_v27  ;;  %698 = vst.msk [vmem:[%s1245_s30 + $0x48] sm:$0xff] %vm688_vm1, %v913_v28 }
 0x1cb   : > { %v906_v29 = vpop.f32.mrf.mxu1  ;;  %v584_v30 = vpop.f32.mrf.mxu0 }
 0x1cc   : > { %696 = vst.msk [vmem:[%s1245_s30 + $0x38] sm:$0xff] %vm688_vm1, %v906_v29  ;;  %697 = vst.msk [vmem:[%s1245_s30 + $0x40] sm:$0xff] %vm688_vm1, %v584_v30 }
 0x1cd   : > { %v509_v31 = vpop.f32.mrf.mxu1  ;;  %v916_v32 = vpop.f32.mrf.mxu0 }
 0x1ce   : > { %695 = vst.msk [vmem:[%s1245_s30 + $0x30] sm:$0xff] %vm688_vm1, %v509_v31  ;;  %700 = vst.msk [vmem:[%s1245_s30 + $0x58] sm:$0xff] %vm688_vm1, %v916_v32 }
 0x1cf   : > { %v923_v33 = vpop.f32.mrf.mxu1  ;;  %v594_v34 = vpop.f32.mrf.mxu0 }
 0x1d0   : > { %702 = vst.msk [vmem:[%s1245_s30 + $0x68] sm:$0xff] %vm688_vm1, %v923_v33  ;;  %699 = vst.msk [vmem:[%s1245_s30 + $0x50] sm:$0xff] %vm688_vm1, %v594_v34 }
 0x1d1   : > { %v669_v35 = vpop.f32.mrf.mxu1 }
 0x1d2   : > { %701 = vst.msk [vmem:[%s1245_s30 + $0x60] sm:$0xff] %vm688_vm1, %v669_v35 }
 0x1d3   : > { %v926_v36 = vpop.f32.mrf.mxu1 }
 0x1d4   : > { %704 = vst.msk [vmem:[%s1245_s30 + $0x78] sm:$0xff] %vm688_vm1, %v926_v36 }
 0x1d5   : > { %v679_v37 = vpop.f32.mrf.mxu1 }
 0x1d6   : > { %703 = vst.msk [vmem:[%s1245_s30 + $0x70] sm:$0xff] %vm688_vm1, %v679_v37 }
 0x1d7   : > { %1018 = shalt.err (!%p1015_p10)
}
 0x1d8   : > { %s1019_s19 = scalar_lea.hbm %s1280_s6, 2048  ;;  %s1023_s26 = scalar_lea.hbm %s1332_s3, 4096 }
 0x1d9   : > { %p1020_p0 = scmp.ne.s32.totalorder %s1280_s6, %s1019_s19  ;;  %p1024_p1 = scmp.lt.s32.totalorder %s1280_s6, %s1332_s3 }
 0x1da   : > { %p1025_p3 = scmp.lt.s32.totalorder %s1023_s26, %s1019_s19 }
 0x1db   : > { %p1021_p2 = pnand %p1020_p0, %p1341_p12 }
 0x1dc   : > { %p1026_p6 = por %p1025_p3, %p1024_p1 }
 0x1dd   : > { %p1022_p9 = pneg %p1021_p2 }
 0x1df   : > { %p1027_p11 = pnand %p1026_p6, %p1022_p9 }
 0x1e1   : > { %1030 = shalt.err (!%p1027_p11)
}
 0x1e2   : > { %s1075_s29 = smov 128   ;;  %s1076_s30 = smov 8  }
 0x1e3   : > { %929 = dma.vmem_to_hbm [thread:$0]  (%p1341_p12), %s1282_s10, 2048, %s1280_s6, %s706_s16, %s1075_s29, %s1075_s29, %s1076_s30  }
 0x1e4 PF: > { %s735_s9 = sand.u32 1, %s1057_s12   ;;  %p1342_p13 = scmp.ne.s32.totalorder %s1338_s25, 0 }
 0x1e5   : > { %p1343_p4 = scmp.ge.s32.totalorder %s1069_s15, 2  ;;  %s736_s11 = scalar_lea.sflag [#allocation4], %s735_s9 }
 0x1e7   : > { %p936_p5 = pnand %p1343_p4, %p1342_p13 }
 0x1e9   : > { %p937_p7 = pneg %p936_p5 }
 0x1eb   : > { %1052 = dma.done.wait (%p937_p7), %s736_s11, 2048  }
 0x1ec   : > { %1054 = vsyncadd (%p937_p7), %s736_s11, 4294965248  ;;  %p16_p8 = scmp.ge.s32.totalorder %s1122_s18, 4   ;;  %s1344_s12 = smov %s1061_s13 }
 0x1ed   : > { %s1345_s13 = smov %s1065_s14  ;;  %s1346_s14 = smov %s1134_s21 }
 0x1ee   : > { %s1347_s15 = smov %s1122_s18  ;;  %18 = sbr.rel (!%p16_p8) target bundleno = 5 (0x5), region = 77 }
 0x1f3   :  { %741 = vsyncpa [#allocation3], 1 }
 0x1f4   :  { %743 = vsyncpa [#allocation3 + $0x1], 1 }
 0x1f5   :  { %744 = vsyncpa [#allocation4], 1 }
 0x1f6   :  { %746 = vsyncpa [#allocation4 + $0x1], 1 }

</bundles_post_ra>
